<compile_context>
chip_gen: v7x
topology: tpu7x:2x2x1
jax: 0.10.0
libtpu: 0.0.40
codegen_flags: <defaults>
</compile_context>

<pallas_src>
import functools

import jax
import jax.numpy as jnp
from jax.experimental import pallas as pl
from jax.experimental.pallas import tpu as pltpu


_LANES = 1024          # lane-dense last dim (multiple of 128)
_MAX_TILE_ROWS = 256   # 256 * 1024 * 4 B = 1 MiB per f32/int32 buffer;
                       # double-buffered in + out ~= 4 MiB VMEM (safe on v7x)


def _threshold_kernel(x_ref, o_ref, *, threshold):
    # Elementwise compare on the VPU. Promote to f32 so narrow integer inputs
    # (e.g. int8 vs threshold=128) and bf16 fractional thresholds are exact.
    # TODO(synk): an int8/bool mask output would cut write traffic 4x if the
    # consumer does not strictly need torch.int (int32).
    x = x_ref[...].astype(jnp.float32)
    o_ref[...] = (x >= jnp.float32(threshold)).astype(jnp.int32)


def threshold_forward(x, threshold=128):
    """Threshold.forward via a Pallas TPU kernel.

    Args:
      x: array of any shape (e.g. NCHW image batch), any numeric dtype.
      threshold: static scalar threshold.
    Returns:
      int32 array of the same shape: 1 where x >= threshold, else 0.
    """
    orig_shape = x.shape
    n = x.size

    # --- lane-dense repack: flatten fully, pad, view as (rows_padded, 1024) ---
    x_flat = x.reshape(-1)
    rows = pl.cdiv(n, _LANES)
    tile_rows = min(rows, _MAX_TILE_ROWS)          # either == rows or 256 (8-divisible)
    rows_padded = pl.cdiv(rows, tile_rows) * tile_rows
    n_padded = rows_padded * _LANES
    if n_padded != n:
        x_flat = jnp.pad(x_flat, (0, n_padded - n))
    x2d = x_flat.reshape(rows_padded, _LANES)

    grid = (rows_padded // tile_rows,)
    kernel = functools.partial(_threshold_kernel, threshold=threshold)

    bytes_accessed = n_padded * x2d.dtype.itemsize + n_padded * 4  # in + int32 out

    out2d = pl.pallas_call(
        kernel,
        out_shape=jax.ShapeDtypeStruct((rows_padded, _LANES), jnp.int32),
        grid=grid,
        in_specs=[pl.BlockSpec((tile_rows, _LANES), lambda i: (i, 0))],
        out_specs=pl.BlockSpec((tile_rows, _LANES), lambda i: (i, 0)),
        compiler_params=pltpu.CompilerParams(
            dimension_semantics=("parallel",),
        ),
        cost_estimate=pl.CostEstimate(
            flops=n_padded,
            transcendentals=0,
            bytes_accessed=bytes_accessed,
        ),
    )(x2d)

    return out2d.reshape(-1)[:n].reshape(orig_shape)


if __name__ == "__main__":
    key = jax.random.PRNGKey(0)

    # Small NCHW image batch; values spread around the default threshold of 128.
    x = jax.random.uniform(key, (2, 4, 16, 16), dtype=jnp.float32) * 255.0

    out = threshold_forward(x, threshold=128)
    out = jax.block_until_ready(out)

    ref = (x >= 128).astype(jnp.int32)
    assert out.dtype == jnp.int32
    assert out.shape == x.shape
    assert bool(jnp.all(out == ref))

    # Also exercise a narrow integer dtype (promoted compare path).
    x_u8 = jnp.round(x).astype(jnp.uint8)
    out_u8 = jax.block_until_ready(threshold_forward(x_u8, threshold=128))
    ref_u8 = (x_u8.astype(jnp.int32) >= 128).astype(jnp.int32)
    assert bool(jnp.all(out_u8 == ref_u8))

    print("KERNEL_OK")
</pallas_src>

<mosaic_0001>
module attributes {stable_mosaic.version = 11 : i64} {
  func.func @_threshold_kernel(%arg0: i32, %arg1: memref<2x1024xf32, #tpu.memory_space<vmem>>, %arg2: memref<2x1024xi32, #tpu.memory_space<vmem>>) attributes {dimension_semantics = [#tpu.dimension_semantics<parallel>], iteration_bounds = array<i64: 1>, scalar_prefetch = 0 : i64, scratch_operands = 0 : i64, tpu.core_type = #tpu.core_type<tc>, window_params = [{transform_indices = @transform_0, window_bounds = array<i64: 2, 1024>}, {transform_indices = @transform_1, window_bounds = array<i64: 2, 1024>}]} {
    %c0 = arith.constant 0 : index
    %c0_0 = arith.constant 0 : index
    %0 = vector.load %arg1[%c0, %c0_0] : memref<2x1024xf32, #tpu.memory_space<vmem>>, vector<2x1024xf32>
    %cst = arith.constant 1.280000e+02 : f32
    %1 = vector.broadcast %cst : f32 to vector<2x1024xf32>
    %2 = arith.cmpf oge, %0, %1 : vector<2x1024xf32>
    %3 = arith.extui %2 : vector<2x1024xi1> to vector<2x1024xi32>
    %c0_1 = arith.constant 0 : index
    %c0_2 = arith.constant 0 : index
    %4 = vector.load %arg2[%c0_1, %c0_2] : memref<2x1024xi32, #tpu.memory_space<vmem>>, vector<2x1024xi32>
    tpu.vector_store %arg2[%c0_1, %c0_2], %3 {strides = array<i32>} : memref<2x1024xi32, #tpu.memory_space<vmem>>, vector<2x1024xi32>,
    return
  }
  func.func @transform_0(%arg0: i32) -> (i32, i32) {
    %c0_i32 = arith.constant 0 : i32
    %c0_i32_0 = arith.constant 0 : i32
    return %arg0, %c0_i32 : i32, i32
  }
  func.func @transform_1(%arg0: i32) -> (i32, i32) {
    %c0_i32 = arith.constant 0 : i32
    %c0_i32_0 = arith.constant 0 : i32
    return %arg0, %c0_i32 : i32, i32
  }
}

</mosaic_0001>

<bundles_post_ra>
// kernel: tpu_custom_call.1
= control target key start
LH: loop header
LB: loop body
LE: loop exit
PB: predicated region body
PF: predicated region fallthrough
CT: control target
= control target key end

     0   :  { %6 = vsyncpa [#allocation3], 0  ;;  %s132_s0 = inlined_call_operand.hbm [shape: f32[2,1024], index: 0, kind: input, shape index: {}]   ;;  %s133_s1 = inlined_call_operand.hbm [shape: s32[2,1024], index: 1, kind: output, shape index: {}]  }
   0x1   :  { %7 = vsyncpa [#allocation4], 0  ;;  %s95_s6 = smov [#allocation2]   ;;  %s47_s10 = scalar_lea.hbm %s132_s0, 256 }
   0x2   :  { %s14_s7 = sshll.u32 %s95_s6, 4  ;;  %p48_p0 = scmp.ne.s32.totalorder %s132_s0, %s47_s10  ;;  %s15_s7 = int_to_ptr.vmem [resolvable:$true] %s14_s7 }
   0x3   :  { %p51_p1 = scmp.lt.u32.totalorder %s47_s10, %s132_s0 }
   0x5   :  { %p53_p2 = pnand %p51_p1, %p48_p0 }
   0x7   :  { %56 = shalt.err (!%p53_p2)
}
   0x8   :  { %s57_s15 = scalar_lea.vmem %s15_s7, 256  ;;  %p62_p4 = scmp.lt.s32.totalorder %s15_s7, %s15_s7 }
   0x9   :  { %p58_p3 = scmp.ne.s32.totalorder %s15_s7, %s57_s15  ;;  %p63_p5 = scmp.lt.s32.totalorder %s57_s15, %s57_s15 }
   0xb   :  { %p64_p6 = por %p63_p5, %p62_p4 }
   0xd   :  { %p65_p7 = pnand %p64_p6, %p58_p3 }
   0xf   :  { %68 = shalt.err (!%p65_p7)
}
  0x10   :  { %17 = dma.hbm_to_vmem [thread:$0]  %s132_s0, 256, %s15_s7, [#allocation3]  }
  0x11   :  { %91 = dma.done.wait [#allocation3], 256  }
  0x12   :  { %92 = vsyncadd [#allocation3], 4294967040  ;;  %s96_s18 = smov [#allocation5]   ;;  %v21_v0 = vld [vmem:[#allocation2] sm:$0xff]  ;;  %v22_v1 = vld [vmem:[#allocation2 + $0x8] sm:$0xff]  ;;  %v97_v2 = vmov 0  }
  0x13   :  { %s35_s19 = sshll.u32 %s96_s18, 4  ;;  %vm23_vm0 = vcmp.ge.f32.partialorder %v21_v0, 128.0  ;;  %vm24_vm1 = vcmp.ge.f32.partialorder %v22_v1, 128.0  ;;  %s36_s19 = int_to_ptr.vmem [resolvable:$true] %s35_s19 }
  0x14   :  { %v25_v3 = vsel %vm23_vm0, 1, %v97_v2  ;;  %v26_v4 = vsel %vm24_vm1, 1, %v97_v2  ;;  %s69_s20 = scalar_lea.vmem %s36_s19, 256  ;;  %p74_p9 = scmp.lt.s32.totalorder %s36_s19, %s36_s19 }
  0x15   :  { %27 = vst [vmem:[#allocation5] sm:$0xff] %v25_v3  ;;  %28 = vst [vmem:[#allocation5 + $0x8] sm:$0xff] %v26_v4  ;;  %p70_p8 = scmp.ne.s32.totalorder %s36_s19, %s69_s20  ;;  %p75_p10 = scmp.lt.s32.totalorder %s69_s20, %s69_s20 }
  0x17   :  { %p76_p11 = por %p75_p10, %p74_p9 }
  0x19   :  { %p77_p12 = pnand %p76_p11, %p70_p8 }
  0x1b   :  { %80 = shalt.err (!%p77_p12)
}
  0x1c   :  { %s81_s22 = scalar_lea.hbm %s133_s1, 256 }
  0x1d   :  { %p82_p13 = scmp.ne.s32.totalorder %s133_s1, %s81_s22  ;;  %p85_p0 = scmp.lt.u32.totalorder %s81_s22, %s133_s1 }
  0x1f   :  { %p87_p1 = pnand %p85_p0, %p82_p13 }
  0x21   :  { %90 = shalt.err (!%p87_p1)
}
  0x22   :  { %38 = dma.vmem_to_hbm [thread:$0]  %s36_s19, 256, %s133_s1, [#allocation4]  }
  0x23   :  { %93 = dma.done.wait [#allocation4], 256  }
  0x24   :  { %94 = vsyncadd [#allocation4], 4294967040 }
  0x25   :  { %42 = vsyncpa [#allocation3], 1 }
  0x26   :  { %43 = vsyncpa [#allocation4], 1 }

</bundles_post_ra>
